<compile_context>
chip_gen: v7x
topology: tpu7x:2x2x1
jax: 0.10.0
libtpu: 0.0.40
codegen_flags: <defaults>
</compile_context>

<pallas_src>
import jax
import jax.numpy as jnp
from jax.experimental import pallas as pl
from jax.experimental.pallas import tpu as pltpu

BN_EPS = 1e-5
LANE = 128               # output channels padded to a multiple of 128 lanes (dense vst / MXU)
MAX_TILE_ROWS = 2048     # rows of the (H*W, :) matmul per grid step (VMEM-bounded)


def _default_vmem_limit_bytes():
    """75% of physical VMEM (v5e/v6e: 128 MiB -> 96 MiB, v7x: 64 MiB -> 48 MiB), <=100 MiB."""
    cap = None
    try:
        cap = getattr(pltpu.get_tpu_info(), "vmem_capacity_bytes", None)
    except Exception:
        cap = None
    if not cap:
        cap = 64 * 1024 * 1024          # conservative fallback (v7x physical VMEM)
    return min(int(cap) * 3 // 4, 100 * 1024 * 1024)


VMEM_LIMIT_BYTES = _default_vmem_limit_bytes()


def _pick_tile_rows(rows, max_rows=MAX_TILE_ROWS):
    """Largest multiple-of-8 divisor of `rows` that is <= max_rows (else the full extent)."""
    d = (min(rows, max_rows) // 8) * 8
    while d >= 8:
        if rows % d == 0:
            return d
        d -= 8
    return rows


def _conv_stats_kernel(x_ref, w_ref, conv_ref, sum_ref, ssq_ref):
    """One grid step: im2col matmul (bf16 operands, f32 accumulation) + BN partial stats.

    x_ref:    (1, TW, K*K*Cin)  bf16  im2col activation patches for this tile
    w_ref:    (K*K*Cin, Cpad)   bf16  folded conv weights (resident across the grid)
    conv_ref: (1, TW, Cpad)     bf16  pre-BN conv output tile (lane dense)
    sum_ref:  (1, 1, Cpad)      f32   per-tile channel sums      (BN partial)
    ssq_ref:  (1, 1, Cpad)      f32   per-tile channel sum-of-sq (BN partial)
    """
    acc = jnp.dot(x_ref[0], w_ref[...], preferred_element_type=jnp.float32)  # (TW, Cpad) f32
    conv_ref[0] = acc.astype(conv_ref.dtype)
    sum_ref[0] = jnp.sum(acc, axis=0, keepdims=True)
    ssq_ref[0] = jnp.sum(acc * acc, axis=0, keepdims=True)
    # TODO(synk): mean-shifted / Welford-style partials would avoid E[x^2]-E[x]^2
    # cancellation at very large N*H*W or large-mean activations.


def _bn_relu_kernel(conv_ref, scale_ref, shift_ref, o_ref):
    """BatchNorm (precomputed per-channel scale/shift) + ReLU on one conv tile.

    conv_ref:  (1, TW, Cpad) bf16
    scale_ref: (1, Cpad)     f32   gamma * rsqrt(var + eps)
    shift_ref: (1, Cpad)     f32   beta - mean * scale
    o_ref:     (1, TW, Cpad) f32
    """
    y = conv_ref[0].astype(jnp.float32) * scale_ref[...] + shift_ref[...]
    o_ref[0] = jnp.maximum(y, 0.0).astype(o_ref.dtype)
    # TODO(synk): Dropout with p > 0 (training) would need pltpu.prng_seed /
    # pltpu.prng_random_bits masking; the module default p = 0 is an identity.


def conv2d_block_forward(x_nchw, weight_oihw, bias, gamma, beta,
                         *, max_tile_rows=MAX_TILE_ROWS):
    """Forward of Conv2DBlock.  x_nchw: (N, Cin, H, W) f32 -> (N, Cout, H, W) f32.

    weight_oihw: (Cout, Cin, K, K) (PyTorch Conv2d layout).  `bias` is accepted for API
    parity but intentionally unused: with training-mode BatchNorm the per-channel mean
    subtraction cancels the conv bias exactly (variance is shift-invariant).
    """
    N, Cin, H, W = x_nchw.shape
    Cout, _, K, _ = weight_oihw.shape
    pad = (K - 1) // 2
    HW = H * W
    KKC = K * K * Cin
    Cpad = ((Cout + LANE - 1) // LANE) * LANE
    TW = _pick_tile_rows(HW, max_tile_rows)     # matmul rows per grid step
    NTW = HW // TW
    NT = N * NTW                                # number of BN partials
    del bias                                    # cancelled by training-mode BN

    # ---- layout glue (outside the kernels) ----
    # NCHW -> NHWC, bf16 (MXU operand dtype), SAME zero pad, im2col patches ordered
    # (kh, kw, cin) to match the folded weight; flattened spatial so the kernels are
    # plain tiled matmul / FMA bodies with lane-dense last dims.
    xb = jnp.transpose(x_nchw, (0, 2, 3, 1)).astype(jnp.bfloat16)
    xp = jnp.pad(xb, ((0, 0), (pad, pad), (pad, pad), (0, 0)))
    cols = [xp[:, kh:kh + H, kw:kw + W, :] for kh in range(K) for kw in range(K)]
    x_col = jnp.concatenate(cols, axis=-1).reshape(N, HW, KKC)            # (N, HW, K*K*Cin)

    # (Cout, Cin, K, K) -> (K*K*Cin, Cpad): (kh, kw, cin) contraction order, zero-padded
    # output channels, bf16 for the MXU.
    w = jnp.transpose(weight_oihw, (2, 3, 1, 0)).reshape(KKC, Cout)
    w = jnp.pad(w, ((0, 0), (0, Cpad - Cout))).astype(jnp.bfloat16)

    cparams = pltpu.CompilerParams(
        dimension_semantics=("parallel", "parallel"),
        vmem_limit_bytes=VMEM_LIMIT_BYTES)

    # ---- pass 1: im2col convolution + per-tile BN partial statistics ----
    conv_out, bsum, bssq = pl.pallas_call(
        _conv_stats_kernel,
        grid_spec=pltpu.PrefetchScalarGridSpec(
            num_scalar_prefetch=0,
            grid=(N, NTW),
            in_specs=[
                pl.BlockSpec((1, TW, KKC), lambda n, t: (n, t, 0)),
                pl.BlockSpec((KKC, Cpad), lambda n, t: (0, 0)),
            ],
            out_specs=[
                pl.BlockSpec((1, TW, Cpad), lambda n, t: (n, t, 0)),
                pl.BlockSpec((1, 1, Cpad), lambda n, t: (n * NTW + t, 0, 0)),
                pl.BlockSpec((1, 1, Cpad), lambda n, t: (n * NTW + t, 0, 0)),
            ],
        ),
        out_shape=(
            jax.ShapeDtypeStruct((N, HW, Cpad), jnp.bfloat16),   # bf16 intermediate
            jax.ShapeDtypeStruct((NT, 1, Cpad), jnp.float32),
            jax.ShapeDtypeStruct((NT, 1, Cpad), jnp.float32),
        ),
        compiler_params=cparams,
        cost_estimate=pl.CostEstimate(
            flops=2 * N * HW * KKC * Cout,
            transcendentals=0,
            bytes_accessed=(x_col.size * 2 + w.size * 2
                            + N * HW * Cpad * 2 + 2 * NT * Cpad * 4),
        ),
    )(x_col, w)

    # ---- BN finalize (tiny, O(NT*Cpad)): batch mean/var -> per-channel scale/shift ----
    inv_count = 1.0 / float(N * HW)
    s_tot = jnp.sum(bsum, axis=(0, 1))                                    # (Cpad,)
    ss_tot = jnp.sum(bssq, axis=(0, 1))                                   # (Cpad,)
    mean = s_tot * inv_count
    var = jnp.maximum(ss_tot * inv_count - mean * mean, 0.0)              # biased batch var
    inv_std = jax.lax.rsqrt(var + BN_EPS)
    gamma_p = jnp.pad(gamma.astype(jnp.float32), (0, Cpad - Cout))
    beta_p = jnp.pad(beta.astype(jnp.float32), (0, Cpad - Cout))
    scale = (gamma_p * inv_std).reshape(1, Cpad)
    shift = (beta_p - mean * gamma_p * inv_std).reshape(1, Cpad)
    # TODO(synk): BatchNorm2d running_mean/running_var updates (module state) are not
    # emitted; only the forward output is produced.

    # ---- pass 2: normalize + ReLU (pure FMA + max, lane-dense stores) ----
    out_flat = pl.pallas_call(
        _bn_relu_kernel,
        grid_spec=pltpu.PrefetchScalarGridSpec(
            num_scalar_prefetch=0,
            grid=(N, NTW),
            in_specs=[
                pl.BlockSpec((1, TW, Cpad), lambda n, t: (n, t, 0)),
                pl.BlockSpec((1, Cpad), lambda n, t: (0, 0)),
                pl.BlockSpec((1, Cpad), lambda n, t: (0, 0)),
            ],
            out_specs=pl.BlockSpec((1, TW, Cpad), lambda n, t: (n, t, 0)),
        ),
        out_shape=jax.ShapeDtypeStruct((N, HW, Cpad), jnp.float32),
        compiler_params=cparams,
        cost_estimate=pl.CostEstimate(
            flops=3 * N * HW * Cpad,
            transcendentals=0,
            bytes_accessed=N * HW * Cpad * (2 + 4) + 2 * Cpad * 4,
        ),
    )(conv_out, scale, shift)

    # Layout glue: drop the lane padding, flat -> NHWC -> NCHW (PyTorch output convention).
    out = out_flat[:, :, :Cout].reshape(N, H, W, Cout)
    return jnp.transpose(out, (0, 3, 1, 2))


if __name__ == "__main__":
    # Small shapes consistent with the module: batch=2, Cin=4, spatial 16x16, Cout=8, K=3.
    N, Cin, H, W = 2, 4, 16, 16
    Cout, K = 8, 3

    key = jax.random.PRNGKey(0)
    kx, kwt, kb = jax.random.split(key, 3)

    x = jax.random.normal(kx, (N, Cin, H, W), dtype=jnp.float32)

    # Parameters in PyTorch layouts: Conv2d weight (Cout, Cin, K, K), bias (Cout,);
    # BatchNorm2d gamma/beta (Cout,).
    fan_in = Cin * K * K
    bound = 1.0 / (fan_in ** 0.5)
    weight = jax.random.uniform(kwt, (Cout, Cin, K, K), jnp.float32, -bound, bound)
    bias = jax.random.uniform(kb, (Cout,), jnp.float32, -bound, bound)
    gamma = jnp.ones((Cout,), jnp.float32)
    beta = jnp.zeros((Cout,), jnp.float32)

    out = jax.jit(conv2d_block_forward)(x, weight, bias, gamma, beta)
    out = jax.block_until_ready(out)

    assert out.shape == (N, Cout, H, W)
    assert bool(jnp.all(out >= 0.0))           # ReLU
    assert bool(jnp.all(jnp.isfinite(out)))

    # Pure-JAX reference (same bf16-rounded conv operands, f32 accumulation / BN math),
    # INCLUDING the conv bias -- also validates that training-mode BN cancels the bias.
    xb = x.astype(jnp.bfloat16).astype(jnp.float32)
    wb = weight.astype(jnp.bfloat16).astype(jnp.float32)
    conv = jax.lax.conv_general_dilated(
        xb, wb, window_strides=(1, 1), padding="SAME",
        dimension_numbers=("NCHW", "OIHW", "NCHW"),
        precision=jax.lax.Precision.HIGHEST) + bias.reshape(1, Cout, 1, 1)
    mu = conv.mean(axis=(0, 2, 3), keepdims=True)
    var = ((conv - mu) ** 2).mean(axis=(0, 2, 3), keepdims=True)
    ref = jnp.maximum((conv - mu) * jax.lax.rsqrt(var + BN_EPS)
                      * gamma.reshape(1, Cout, 1, 1) + beta.reshape(1, Cout, 1, 1), 0.0)
    max_err = float(jnp.max(jnp.abs(out - ref)))
    assert bool(jnp.allclose(out, ref, atol=5e-2, rtol=5e-2)), max_err

    print("KERNEL_OK")
</pallas_src>

<mosaic_0001>
module attributes {stable_mosaic.version = 11 : i64} {
  func.func @_conv_stats_kernel(%arg0: i32, %arg1: i32, %arg2: memref<1x256x36xbf16, #tpu.memory_space<vmem>>, %arg3: memref<36x128xbf16, #tpu.memory_space<vmem>>, %arg4: memref<1x256x128xbf16, #tpu.memory_space<vmem>>, %arg5: memref<1x1x128xf32, #tpu.memory_space<vmem>>, %arg6: memref<1x1x128xf32, #tpu.memory_space<vmem>>) attributes {dimension_semantics = [#tpu.dimension_semantics<parallel>, #tpu.dimension_semantics<parallel>], iteration_bounds = array<i64: 2, 1>, scalar_prefetch = 0 : i64, scratch_operands = 0 : i64, tpu.core_type = #tpu.core_type<tc>, window_params = [{transform_indices = @transform_0, window_bounds = array<i64: 1, 256, 36>}, {pipeline_mode = #tpu.pipeline_mode<synchronous>, transform_indices = @transform_1, window_bounds = array<i64: 36, 128>}, {transform_indices = @transform_2, window_bounds = array<i64: 1, 256, 128>}, {transform_indices = @transform_3, window_bounds = array<i64: 1, 1, 128>}, {transform_indices = @transform_4, window_bounds = array<i64: 1, 1, 128>}]} {
    %c0 = arith.constant 0 : index
    %c0_0 = arith.constant 0 : index
    %c0_1 = arith.constant 0 : index
    %0 = vector.load %arg2[%c0, %c0_0, %c0_1] : memref<1x256x36xbf16, #tpu.memory_space<vmem>>, vector<1x256x36xbf16>
    %1 = vector.shape_cast %0 : vector<1x256x36xbf16> to vector<256x36xbf16>
    %c0_2 = arith.constant 0 : index
    %c0_3 = arith.constant 0 : index
    %2 = vector.load %arg3[%c0_2, %c0_3] : memref<36x128xbf16, #tpu.memory_space<vmem>>, vector<36x128xbf16>
    %cst = arith.constant dense<0.000000e+00> : vector<256x128xf32>
    %3 = tpu.matmul %1, %2, %cst {dimension_numbers = #tpu.dot_dimension_numbers<[1], [0], [0], [1], [0, 0, 1, 1], [], []>} : vector<256x36xbf16>, vector<36x128xbf16>, vector<256x128xf32> -> vector<256x128xf32>
    %4 = arith.truncf %3 : vector<256x128xf32> to vector<256x128xbf16>
    %c0_4 = arith.constant 0 : index
    %c0_5 = arith.constant 0 : index
    %c0_6 = arith.constant 0 : index
    %5 = vector.load %arg4[%c0_4, %c0_5, %c0_6] : memref<1x256x128xbf16, #tpu.memory_space<vmem>>, vector<1x256x128xbf16>
    %6 = vector.shape_cast %5 : vector<1x256x128xbf16> to vector<256x128xbf16>
    %7 = vector.shape_cast %4 : vector<256x128xbf16> to vector<1x256x128xbf16>
    tpu.vector_store %arg4[%c0_4, %c0_5, %c0_6], %7 {strides = array<i32>} : memref<1x256x128xbf16, #tpu.memory_space<vmem>>, vector<1x256x128xbf16>,
    %cst_7 = arith.constant dense<0.000000e+00> : vector<128xf32>
    %8 = vector.multi_reduction <add>, %3, %cst_7 [0] : vector<256x128xf32> to vector<128xf32>
    %9 = vector.shape_cast %8 : vector<128xf32> to vector<1x128xf32>
    %c0_8 = arith.constant 0 : index
    %c0_9 = arith.constant 0 : index
    %c0_10 = arith.constant 0 : index
    %10 = vector.load %arg5[%c0_8, %c0_9, %c0_10] : memref<1x1x128xf32, #tpu.memory_space<vmem>>, vector<1x1x128xf32>
    %11 = vector.shape_cast %10 : vector<1x1x128xf32> to vector<1x128xf32>
    %12 = vector.shape_cast %9 : vector<1x128xf32> to vector<1x1x128xf32>
    tpu.vector_store %arg5[%c0_8, %c0_9, %c0_10], %12 {strides = array<i32>} : memref<1x1x128xf32, #tpu.memory_space<vmem>>, vector<1x1x128xf32>,
    %13 = arith.mulf %3, %3 : vector<256x128xf32>
    %cst_11 = arith.constant dense<0.000000e+00> : vector<128xf32>
    %14 = vector.multi_reduction <add>, %13, %cst_11 [0] : vector<256x128xf32> to vector<128xf32>
    %15 = vector.shape_cast %14 : vector<128xf32> to vector<1x128xf32>
    %c0_12 = arith.constant 0 : index
    %c0_13 = arith.constant 0 : index
    %c0_14 = arith.constant 0 : index
    %16 = vector.load %arg6[%c0_12, %c0_13, %c0_14] : memref<1x1x128xf32, #tpu.memory_space<vmem>>, vector<1x1x128xf32>
    %17 = vector.shape_cast %16 : vector<1x1x128xf32> to vector<1x128xf32>
    %18 = vector.shape_cast %15 : vector<1x128xf32> to vector<1x1x128xf32>
    tpu.vector_store %arg6[%c0_12, %c0_13, %c0_14], %18 {strides = array<i32>} : memref<1x1x128xf32, #tpu.memory_space<vmem>>, vector<1x1x128xf32>,
    return
  }
  func.func @transform_0(%arg0: i32, %arg1: i32) -> (i32, i32, i32) {
    %c0_i32 = arith.constant 0 : i32
    %c0_i32_0 = arith.constant 0 : i32
    return %arg0, %arg1, %c0_i32 : i32, i32, i32
  }
  func.func @transform_1(%arg0: i32, %arg1: i32) -> (i32, i32) {
    %c0_i32 = arith.constant 0 : i32
    %c0_i32_0 = arith.constant 0 : i32
    %c0_i32_1 = arith.constant 0 : i32
    return %c0_i32, %c0_i32_0 : i32, i32
  }
  func.func @transform_2(%arg0: i32, %arg1: i32) -> (i32, i32, i32) {
    %c0_i32 = arith.constant 0 : i32
    %c0_i32_0 = arith.constant 0 : i32
    return %arg0, %arg1, %c0_i32 : i32, i32, i32
  }
  func.func @transform_3(%arg0: i32, %arg1: i32) -> (i32, i32, i32) {
    %c1_i32 = arith.constant 1 : i32
    %0 = arith.muli %arg0, %c1_i32 : i32
    %1 = arith.addi %0, %arg1 : i32
    %c0_i32 = arith.constant 0 : i32
    %c0_i32_0 = arith.constant 0 : i32
    %c0_i32_1 = arith.constant 0 : i32
    return %1, %c0_i32, %c0_i32_0 : i32, i32, i32
  }
  func.func @transform_4(%arg0: i32, %arg1: i32) -> (i32, i32, i32) {
    %c1_i32 = arith.constant 1 : i32
    %0 = arith.muli %arg0, %c1_i32 : i32
    %1 = arith.addi %0, %arg1 : i32
    %c0_i32 = arith.constant 0 : i32
    %c0_i32_0 = arith.constant 0 : i32
    %c0_i32_1 = arith.constant 0 : i32
    return %1, %c0_i32, %c0_i32_0 : i32, i32, i32
  }
}

module attributes {stable_mosaic.version = 11 : i64} {
  func.func @_bn_relu_kernel(%arg0: i32, %arg1: i32, %arg2: memref<1x256x128xbf16, #tpu.memory_space<vmem>>, %arg3: memref<1x128xf32, #tpu.memory_space<vmem>>, %arg4: memref<1x128xf32, #tpu.memory_space<vmem>>, %arg5: memref<1x256x128xf32, #tpu.memory_space<vmem>>) attributes {dimension_semantics = [#tpu.dimension_semantics<parallel>, #tpu.dimension_semantics<parallel>], iteration_bounds = array<i64: 2, 1>, scalar_prefetch = 0 : i64, scratch_operands = 0 : i64, tpu.core_type = #tpu.core_type<tc>, window_params = [{transform_indices = @transform_0, window_bounds = array<i64: 1, 256, 128>}, {pipeline_mode = #tpu.pipeline_mode<synchronous>, transform_indices = @transform_1, window_bounds = array<i64: 1, 128>}, {pipeline_mode = #tpu.pipeline_mode<synchronous>, transform_indices = @transform_2, window_bounds = array<i64: 1, 128>}, {transform_indices = @transform_3, window_bounds = array<i64: 1, 256, 128>}]} {
    %c0 = arith.constant 0 : index
    %c0_0 = arith.constant 0 : index
    %c0_1 = arith.constant 0 : index
    %0 = vector.load %arg2[%c0, %c0_0, %c0_1] : memref<1x256x128xbf16, #tpu.memory_space<vmem>>, vector<1x256x128xbf16>
    %1 = vector.shape_cast %0 : vector<1x256x128xbf16> to vector<256x128xbf16>
    %2 = arith.extf %1 : vector<256x128xbf16> to vector<256x128xf32>
    %c0_2 = arith.constant 0 : index
    %c0_3 = arith.constant 0 : index
    %3 = vector.load %arg3[%c0_2, %c0_3] : memref<1x128xf32, #tpu.memory_space<vmem>>, vector<1x128xf32>
    %4 = vector.broadcast %3 : vector<1x128xf32> to vector<256x128xf32>
    %5 = arith.mulf %2, %4 : vector<256x128xf32>
    %c0_4 = arith.constant 0 : index
    %c0_5 = arith.constant 0 : index
    %6 = vector.load %arg4[%c0_4, %c0_5] : memref<1x128xf32, #tpu.memory_space<vmem>>, vector<1x128xf32>
    %7 = vector.broadcast %6 : vector<1x128xf32> to vector<256x128xf32>
    %8 = arith.addf %5, %7 : vector<256x128xf32>
    %cst = arith.constant 0.000000e+00 : f32
    %9 = vector.broadcast %cst : f32 to vector<256x128xf32>
    %10 = arith.maximumf %8, %9 : vector<256x128xf32>
    %c0_6 = arith.constant 0 : index
    %c0_7 = arith.constant 0 : index
    %c0_8 = arith.constant 0 : index
    %11 = vector.load %arg5[%c0_6, %c0_7, %c0_8] : memref<1x256x128xf32, #tpu.memory_space<vmem>>, vector<1x256x128xf32>
    %12 = vector.shape_cast %11 : vector<1x256x128xf32> to vector<256x128xf32>
    %13 = vector.shape_cast %10 : vector<256x128xf32> to vector<1x256x128xf32>
    tpu.vector_store %arg5[%c0_6, %c0_7, %c0_8], %13 {strides = array<i32>} : memref<1x256x128xf32, #tpu.memory_space<vmem>>, vector<1x256x128xf32>,
    return
  }
  func.func @transform_0(%arg0: i32, %arg1: i32) -> (i32, i32, i32) {
    %c0_i32 = arith.constant 0 : i32
    %c0_i32_0 = arith.constant 0 : i32
    return %arg0, %arg1, %c0_i32 : i32, i32, i32
  }
  func.func @transform_1(%arg0: i32, %arg1: i32) -> (i32, i32) {
    %c0_i32 = arith.constant 0 : i32
    %c0_i32_0 = arith.constant 0 : i32
    %c0_i32_1 = arith.constant 0 : i32
    return %c0_i32, %c0_i32_0 : i32, i32
  }
  func.func @transform_2(%arg0: i32, %arg1: i32) -> (i32, i32) {
    %c0_i32 = arith.constant 0 : i32
    %c0_i32_0 = arith.constant 0 : i32
    %c0_i32_1 = arith.constant 0 : i32
    return %c0_i32, %c0_i32_0 : i32, i32
  }
  func.func @transform_3(%arg0: i32, %arg1: i32) -> (i32, i32, i32) {
    %c0_i32 = arith.constant 0 : i32
    %c0_i32_0 = arith.constant 0 : i32
    return %arg0, %arg1, %c0_i32 : i32, i32, i32
  }
}

</mosaic_0001>

<bundles_post_ra>
// kernel: conv2d_block_forward.3
= control target key start
LH: loop header
LB: loop body
LE: loop exit
PB: predicated region body
PF: predicated region fallthrough
CT: control target
= control target key end

     0   :  { %s665_s12 = smov 0   ;;  %s667_s13 = smov 0   ;;  %s828_s0 = inlined_call_operand.vmem [shape: bf16[2,256,128], index: 0, kind: input, shape index: {}]   ;;  %s829_s1 = inlined_call_operand.vmem [shape: f32[1,128], index: 1, kind: input, shape index: {}]   ;;  %s830_s2 = inlined_call_operand.vmem [shape: f32[1,128], index: 2, kind: input, shape index: {}]   ;;  %s831_s3 = inlined_call_operand.vmem [shape: f32[2,256,128], index: 3, kind: output, shape index: {}]  }
   0x1   :  { %s669_s14 = smov 0  }
   0x2 LB: > { %s25_s15 = sadd.s32 1, %s639_s13  ;;  %p507_p0 = scmp.ge.s32.totalorder %s643_s14, 1  ;;  %s643_s14 = sphi %s669_s14, %s13_s14   ;;  %s639_s13 = sphi %s667_s13, %s833_s13   ;;  %s635_s12 = sphi %s665_s12, %s832_s12  }
   0x3   : > { %p27_p1 = scmp.ge.s32.totalorder %s25_s15, 2  ;;  %p158_p2 = scmp.lt.s32.totalorder %s643_s14, 3 }
   0x5   : > { %s835_s15 = smov (%p27_p1, %s25_s15), 0  ;;  %p159_p3 = pnand %p507_p0, %p158_p2 }
   0x6   : > { %p191_p4 = scmp.lt.s32.totalorder (!%p159_p3), %s635_s12, 1  ;;  %v694_v0 = vld [vmem:[%s829_s1] ss:$0 sm:$0xff] (!%p159_p3) }
   0x7   : > { %162 = sbr.rel (%p159_p3) target bundleno = 54 (0x36), region = 32  ;;  %v703_v9 = vld [vmem:[%s830_s2] ss:$0 sm:$0xff] (!%p159_p3) }
   0xe   : > { %s837_s12 = smov (!%p191_p4, %s635_s12), 1 }
   0xf   : > { %s516_s16 = sshll.u32 %s837_s12, 7  ;;  %s517_s24 = sshll.u32 %s837_s12, 8 }
  0x10   : > { %s689_s19 = scalar_lea.vmem %s828_s0, %s516_s16  ;;  %s721_s27 = scalar_lea.vmem %s831_s3, %s517_s24 }
  0x11   : > { %v519_v1 = vld [vmem:[%s689_s19] sm:$0xff]   ;;  %v582_v2 = vld [vmem:[%s689_s19 + $0x8] sm:$0xff]   ;;  %v583_v3 = vld [vmem:[%s689_s19 + $0x10] sm:$0xff]  }
  0x12   : > { %v520_v4 = vunpack.c.l.bf16 %v519_v1  ;;  %v521_v5 = vunpack.c.h.bf16 %v519_v1  ;;  %v524_v6 = vunpack.c.l.bf16 %v582_v2  ;;  %v525_v7 = vunpack.c.h.bf16 %v582_v2  ;;  %v584_v8 = vld [vmem:[%s689_s19 + $0x18] sm:$0xff]   ;;  %v585_v30 = vld [vmem:[%s689_s19 + $0x20] sm:$0xff]   ;;  %v586_v31 = vld [vmem:[%s689_s19 + $0x28] sm:$0xff]  }
  0x13   : > { %v528_v10 = vunpack.c.l.bf16 %v583_v3  ;;  %v529_v11 = vunpack.c.h.bf16 %v583_v3  ;;  %v532_v12 = vunpack.c.l.bf16 %v584_v8  ;;  %v533_v13 = vunpack.c.h.bf16 %v584_v8  ;;  %v587_v36 = vld [vmem:[%s689_s19 + $0x30] sm:$0xff]   ;;  %v588_v37 = vld [vmem:[%s689_s19 + $0x38] sm:$0xff]   ;;  %v589_v3 = vld [vmem:[%s689_s19 + $0x40] sm:$0xff]  }
  0x14   : > { %v281_v14 = vmul.f32 %v520_v4, %v694_v0  ;;  %v282_v15 = vmul.f32 %v521_v5, %v694_v0  ;;  %v283_v16 = vmul.f32 %v524_v6, %v694_v0  ;;  %v284_v17 = vmul.f32 %v525_v7, %v694_v0  ;;  %v590_v4 = vld [vmem:[%s689_s19 + $0x48] sm:$0xff]  }
  0x15   : > { %v285_v18 = vmul.f32 %v528_v10, %v694_v0  ;;  %v286_v19 = vmul.f32 %v529_v11, %v694_v0  ;;  %v287_v20 = vmul.f32 %v532_v12, %v694_v0  ;;  %v288_v21 = vmul.f32 %v533_v13, %v694_v0  ;;  %v591_v10 = vld [vmem:[%s689_s19 + $0x50] sm:$0xff]   ;;  %v592_v11 = vld [vmem:[%s689_s19 + $0x58] sm:$0xff]  }
  0x16   : > { %v320_v22 = vadd.f32 %v703_v9, %v281_v14  ;;  %v321_v23 = vadd.f32 %v703_v9, %v282_v15  ;;  %v322_v24 = vadd.f32 %v703_v9, %v283_v16  ;;  %v323_v25 = vadd.f32 %v703_v9, %v284_v17 }
  0x17   : > { %v324_v26 = vadd.f32 %v703_v9, %v285_v18  ;;  %v325_v27 = vadd.f32 %v703_v9, %v286_v19  ;;  %v326_v28 = vadd.f32 %v703_v9, %v287_v20  ;;  %v327_v29 = vadd.f32 %v703_v9, %v288_v21 }
  0x18   : > { %v352_v32 = vmax.f32 %v320_v22, 0.0  ;;  %v353_v33 = vmax.f32 %v321_v23, 0.0  ;;  %v354_v34 = vmax.f32 %v322_v24, 0.0  ;;  %v355_v35 = vmax.f32 %v323_v25, 0.0 }
  0x19   : > { %v356_v38 = vmax.f32 %v324_v26, 0.0  ;;  %v357_v39 = vmax.f32 %v325_v27, 0.0  ;;  %v358_v40 = vmax.f32 %v326_v28, 0.0  ;;  %v359_v41 = vmax.f32 %v327_v29, 0.0 }
  0x1a   : > { %384 = vst [vmem:[%s721_s27] sm:$0xff] %v352_v32  ;;  %385 = vst [vmem:[%s721_s27 + $0x8] sm:$0xff] %v353_v33  ;;  %v536_v42 = vunpack.c.l.bf16 %v585_v30  ;;  %v537_v43 = vunpack.c.h.bf16 %v585_v30  ;;  %v540_v44 = vunpack.c.l.bf16 %v586_v31  ;;  %v541_v45 = vunpack.c.h.bf16 %v586_v31 }
  0x1b   : > { %386 = vst [vmem:[%s721_s27 + $0x10] sm:$0xff] %v354_v34  ;;  %387 = vst [vmem:[%s721_s27 + $0x18] sm:$0xff] %v355_v35  ;;  %v544_v46 = vunpack.c.l.bf16 %v587_v36  ;;  %v545_v47 = vunpack.c.h.bf16 %v587_v36  ;;  %v548_v48 = vunpack.c.l.bf16 %v588_v37  ;;  %v549_v49 = vunpack.c.h.bf16 %v588_v37 }
  0x1c   : > { %388 = vst [vmem:[%s721_s27 + $0x20] sm:$0xff] %v356_v38  ;;  %389 = vst [vmem:[%s721_s27 + $0x28] sm:$0xff] %v357_v39  ;;  %v289_v50 = vmul.f32 %v536_v42, %v694_v0  ;;  %v290_v51 = vmul.f32 %v537_v43, %v694_v0  ;;  %v291_v52 = vmul.f32 %v540_v44, %v694_v0  ;;  %v552_v16 = vunpack.c.l.bf16 %v589_v3 }
  0x1d   : > { %390 = vst [vmem:[%s721_s27 + $0x30] sm:$0xff] %v358_v40  ;;  %391 = vst [vmem:[%s721_s27 + $0x38] sm:$0xff] %v359_v41  ;;  %v292_v53 = vmul.f32 %v541_v45, %v694_v0  ;;  %v293_v54 = vmul.f32 %v544_v46, %v694_v0  ;;  %v294_v55 = vmul.f32 %v545_v47, %v694_v0  ;;  %v553_v17 = vunpack.c.h.bf16 %v589_v3  ;;  %v593_v40 = vld [vmem:[%s689_s19 + $0x60] sm:$0xff]   ;;  %v594_v41 = vld [vmem:[%s689_s19 + $0x68] sm:$0xff]  }
  0x1e   : > { %v295_v56 = vmul.f32 %v548_v48, %v694_v0  ;;  %v296_v57 = vmul.f32 %v549_v49, %v694_v0  ;;  %v328_v58 = vadd.f32 %v703_v9, %v289_v50  ;;  %v329_v59 = vadd.f32 %v703_v9, %v290_v51  ;;  %v595_v46 = vld [vmem:[%s689_s19 + $0x70] sm:$0xff]   ;;  %v596_v47 = vld [vmem:[%s689_s19 + $0x78] sm:$0xff]  }
  0x1f   : > { %v330_v60 = vadd.f32 %v703_v9, %v291_v52  ;;  %v331_v61 = vadd.f32 %v703_v9, %v292_v53  ;;  %v332_v62 = vadd.f32 %v703_v9, %v293_v54  ;;  %v333_v63 = vadd.f32 %v703_v9, %v294_v55 }
  0x20   : > { %v334_v1 = vadd.f32 %v703_v9, %v295_v56  ;;  %v335_v2 = vadd.f32 %v703_v9, %v296_v57  ;;  %v360_v5 = vmax.f32 %v328_v58, 0.0  ;;  %v361_v6 = vmax.f32 %v329_v59, 0.0 }
  0x21   : > { %v362_v7 = vmax.f32 %v330_v60, 0.0  ;;  %v363_v8 = vmax.f32 %v331_v61, 0.0  ;;  %v364_v12 = vmax.f32 %v332_v62, 0.0  ;;  %v365_v13 = vmax.f32 %v333_v63, 0.0 }
  0x22   : > { %v366_v14 = vmax.f32 %v334_v1, 0.0  ;;  %v367_v15 = vmax.f32 %v335_v2, 0.0  ;;  %392 = vst [vmem:[%s721_s27 + $0x40] sm:$0xff] %v360_v5  ;;  %393 = vst [vmem:[%s721_s27 + $0x48] sm:$0xff] %v361_v6  ;;  %v556_v18 = vunpack.c.l.bf16 %v590_v4  ;;  %v557_v19 = vunpack.c.h.bf16 %v590_v4 }
  0x23   : > { %394 = vst [vmem:[%s721_s27 + $0x50] sm:$0xff] %v362_v7  ;;  %395 = vst [vmem:[%s721_s27 + $0x58] sm:$0xff] %v363_v8  ;;  %v560_v20 = vunpack.c.l.bf16 %v591_v10  ;;  %v561_v21 = vunpack.c.h.bf16 %v591_v10  ;;  %v564_v22 = vunpack.c.l.bf16 %v592_v11  ;;  %v565_v23 = vunpack.c.h.bf16 %v592_v11 }
  0x24   : > { %396 = vst [vmem:[%s721_s27 + $0x60] sm:$0xff] %v364_v12  ;;  %397 = vst [vmem:[%s721_s27 + $0x68] sm:$0xff] %v365_v13  ;;  %v297_v24 = vmul.f32 %v552_v16, %v694_v0  ;;  %v298_v25 = vmul.f32 %v553_v17, %v694_v0  ;;  %v299_v26 = vmul.f32 %v556_v18, %v694_v0  ;;  %v568_v52 = vunpack.c.l.bf16 %v593_v40 }
  0x25   : > { %398 = vst [vmem:[%s721_s27 + $0x70] sm:$0xff] %v366_v14  ;;  %399 = vst [vmem:[%s721_s27 + $0x78] sm:$0xff] %v367_v15  ;;  %v300_v27 = vmul.f32 %v557_v19, %v694_v0  ;;  %v301_v28 = vmul.f32 %v560_v20, %v694_v0  ;;  %v302_v29 = vmul.f32 %v561_v21, %v694_v0  ;;  %v569_v53 = vunpack.c.h.bf16 %v593_v40 }
  0x26   : > { %v303_v30 = vmul.f32 %v564_v22, %v694_v0  ;;  %v304_v31 = vmul.f32 %v565_v23, %v694_v0  ;;  %v336_v32 = vadd.f32 %v703_v9, %v297_v24  ;;  %v337_v33 = vadd.f32 %v703_v9, %v298_v25 }
  0x27   : > { %v338_v34 = vadd.f32 %v703_v9, %v299_v26  ;;  %v339_v35 = vadd.f32 %v703_v9, %v300_v27  ;;  %v340_v36 = vadd.f32 %v703_v9, %v301_v28  ;;  %v341_v37 = vadd.f32 %v703_v9, %v302_v29 }
  0x28   : > { %v342_v38 = vadd.f32 %v703_v9, %v303_v30  ;;  %v343_v39 = vadd.f32 %v703_v9, %v304_v31  ;;  %v368_v42 = vmax.f32 %v336_v32, 0.0  ;;  %v369_v43 = vmax.f32 %v337_v33, 0.0 }
  0x29   : > { %v370_v44 = vmax.f32 %v338_v34, 0.0  ;;  %v371_v45 = vmax.f32 %v339_v35, 0.0  ;;  %v372_v48 = vmax.f32 %v340_v36, 0.0  ;;  %v373_v49 = vmax.f32 %v341_v37, 0.0 }
  0x2a   : > { %v374_v50 = vmax.f32 %v342_v38, 0.0  ;;  %v375_v51 = vmax.f32 %v343_v39, 0.0  ;;  %400 = vst [vmem:[%s721_s27 + $0x80] sm:$0xff] %v368_v42  ;;  %401 = vst [vmem:[%s721_s27 + $0x88] sm:$0xff] %v369_v43  ;;  %v572_v54 = vunpack.c.l.bf16 %v594_v41  ;;  %v573_v55 = vunpack.c.h.bf16 %v594_v41 }
  0x2b   : > { %402 = vst [vmem:[%s721_s27 + $0x90] sm:$0xff] %v370_v44  ;;  %403 = vst [vmem:[%s721_s27 + $0x98] sm:$0xff] %v371_v45  ;;  %v576_v56 = vunpack.c.l.bf16 %v595_v46  ;;  %v577_v57 = vunpack.c.h.bf16 %v595_v46  ;;  %v580_v58 = vunpack.c.l.bf16 %v596_v47  ;;  %v581_v59 = vunpack.c.h.bf16 %v596_v47 }
  0x2c   : > { %404 = vst [vmem:[%s721_s27 + $0xa0] sm:$0xff] %v372_v48  ;;  %405 = vst [vmem:[%s721_s27 + $0xa8] sm:$0xff] %v373_v49  ;;  %v305_v60 = vmul.f32 %v568_v52, %v694_v0  ;;  %v306_v61 = vmul.f32 %v569_v53, %v694_v0  ;;  %v307_v62 = vmul.f32 %v572_v54, %v694_v0 }
  0x2d   : > { %406 = vst [vmem:[%s721_s27 + $0xb0] sm:$0xff] %v374_v50  ;;  %407 = vst [vmem:[%s721_s27 + $0xb8] sm:$0xff] %v375_v51  ;;  %v308_v63 = vmul.f32 %v573_v55, %v694_v0  ;;  %v309_v1 = vmul.f32 %v576_v56, %v694_v0  ;;  %v310_v2 = vmul.f32 %v577_v57, %v694_v0 }
  0x2e   : > { %v311_v3 = vmul.f32 %v580_v58, %v694_v0  ;;  %v312_v4 = vmul.f32 %v581_v59, %v694_v0  ;;  %v344_v5 = vadd.f32 %v703_v9, %v305_v60  ;;  %v345_v6 = vadd.f32 %v703_v9, %v306_v61 }
  0x2f   : > { %v346_v7 = vadd.f32 %v703_v9, %v307_v62  ;;  %v347_v8 = vadd.f32 %v703_v9, %v308_v63  ;;  %v348_v10 = vadd.f32 %v703_v9, %v309_v1  ;;  %v349_v11 = vadd.f32 %v703_v9, %v310_v2 }
  0x30   : > { %v350_v0 = vadd.f32 %v703_v9, %v311_v3  ;;  %v351_v12 = vadd.f32 %v703_v9, %v312_v4  ;;  %v376_v13 = vmax.f32 %v344_v5, 0.0  ;;  %v377_v14 = vmax.f32 %v345_v6, 0.0 }
  0x31   : > { %v378_v15 = vmax.f32 %v346_v7, 0.0  ;;  %v379_v16 = vmax.f32 %v347_v8, 0.0  ;;  %v380_v17 = vmax.f32 %v348_v10, 0.0  ;;  %v381_v18 = vmax.f32 %v349_v11, 0.0 }
  0x32   : > { %v382_v19 = vmax.f32 %v350_v0, 0.0  ;;  %v383_v20 = vmax.f32 %v351_v12, 0.0  ;;  %408 = vst [vmem:[%s721_s27 + $0xc0] sm:$0xff] %v376_v13  ;;  %409 = vst [vmem:[%s721_s27 + $0xc8] sm:$0xff] %v377_v14 }
  0x33   : > { %410 = vst [vmem:[%s721_s27 + $0xd0] sm:$0xff] %v378_v15  ;;  %411 = vst [vmem:[%s721_s27 + $0xd8] sm:$0xff] %v379_v16 }
  0x34   : > { %412 = vst [vmem:[%s721_s27 + $0xe0] sm:$0xff] %v380_v17  ;;  %413 = vst [vmem:[%s721_s27 + $0xe8] sm:$0xff] %v381_v18 }
  0x35   : > { %414 = vst [vmem:[%s721_s27 + $0xf0] sm:$0xff] %v382_v19  ;;  %415 = vst [vmem:[%s721_s27 + $0xf8] sm:$0xff] %v383_v20 }
  0x36 PF: > { %s13_s14 = sadd.s32 1, %s643_s14   ;;  %s832_s12 = smov %s639_s13 }
  0x37   : > { %p10_p5 = scmp.ge.s32.totalorder %s13_s14, 4   ;;  %s833_s13 = smov %s835_s15 }
  0x39   :  { %12 = sbr.rel (!%p10_p5) target bundleno = 2 (0x2), region = 62 }

// kernel: conv2d_block_forward.2
= control target key start
LH: loop header
LB: loop body
LE: loop exit
PB: predicated region body
PF: predicated region fallthrough
CT: control target
= control target key end

     0   :  { %s1386_s15 = smov 0   ;;  %s1388_s16 = smov 0   ;;  %s1567_s0 = inlined_call_operand.vmem [shape: bf16[2,256,36], index: 0, kind: input, shape index: {}]   ;;  %s1568_s1 = inlined_call_operand.vmem [shape: bf16[36,128], index: 1, kind: input, shape index: {}]   ;;  %s1569_s2 = inlined_call_operand.vmem [shape: bf16[2,256,128], index: 2, kind: output, shape index: {0}]   ;;  %s1570_s3 = inlined_call_operand.vmem [shape: f32[2,1,128], index: 3, kind: output, shape index: {1}]   ;;  %s1571_s4 = inlined_call_operand.vmem [shape: f32[2,1,128], index: 4, kind: output, shape index: {2}]  }
   0x1   :  { %s1390_s17 = smov 0  }
   0x2 LB: > { %s27_s18 = sadd.s32 1, %s1355_s16  ;;  %p1026_p0 = scmp.ge.s32.totalorder %s1359_s17, 1  ;;  %s1359_s17 = sphi %s1390_s17, %s15_s17   ;;  %s1355_s16 = sphi %s1388_s16, %s1573_s16   ;;  %s1351_s15 = sphi %s1386_s15, %s1572_s15  }
   0x3   : > { %p29_p1 = scmp.ge.s32.totalorder %s27_s18, 2  ;;  %p192_p2 = scmp.lt.s32.totalorder %s1359_s17, 3 }
   0x5   : > { %s1575_s18 = smov (%p29_p1, %s27_s18), 0  ;;  %p193_p3 = pnand %p1026_p0, %p192_p2 }
   0x6   : > { %v1318_v0 = vld [vmem:[%s1568_s1] sm:$0xff] (!%p193_p3)   ;;  %v1319_v1 = vld [vmem:[%s1568_s1 + $0x8] sm:$0xff] (!%p193_p3)   ;;  %p235_p4 = scmp.lt.s32.totalorder (!%p193_p3), %s1351_s15, 1  ;;  %v1320_v2 = vld [vmem:[%s1568_s1 + $0x10] ss:$0 sps:$4 sm:$0x33] (!%p193_p3)  }
   0x7   : > { %196 = sbr.rel (%p193_p3) target bundleno = 311 (0x137), region = 28  ;;  %1248 = vmatprep.subr.bf16.mxu0 (!%p193_p3), %v1318_v0  ;;  %1286 = vmatprep.subr.bf16.mxu1 (!%p193_p3), %v1318_v0  ;;  %vm446_vm0 = vcmask (!%p193_p3), 1041408   ;;  %vm397_vm1 = vcmask (!%p193_p3), 293888  }
   0x8   : > { %1249 = vmatpush3.bf16.msra.mxu0 (!%p193_p3), %v1318_v0  ;;  %1289 = vmatpush3.bf16.msra.mxu1 (!%p193_p3), %v1318_v0  ;;  %v448_v4 = vsel (!%p193_p3), %vm446_vm0, %v1320_v2, 0 }
   0x9   : > { %1250 = vmatprep.subr.bf16.mxu0 (!%p193_p3), %v1319_v1  ;;  %1287 = vmatprep.subr.bf16.mxu1 (!%p193_p3), %v1319_v1 }
   0xc   : > { %1251 = vmatpush3.bf16.msra.mxu0 (!%p193_p3), %v1319_v1  ;;  %1290 = vmatpush3.bf16.msra.mxu1 (!%p193_p3), %v1319_v1 }
   0xd   : > { %1292 = vmatprep.subr.msk.bf16.mxu0 (!%p193_p3), %vm446_vm0, %v1320_v2  ;;  %1293 = vmatprep.subr.msk.bf16.mxu1 (!%p193_p3), %vm446_vm0, %v1320_v2 }
   0xe   : > { %s1577_s15 = smov (!%p235_p4, %s1351_s15), 1 }
   0xf   : > { %s1100_s25 = sshll.u32 %s1577_s15, 7  ;;  %s257_s8 = scalar_lea.vmem %s1570_s3, %s1577_s15 }
  0x10   : > { %s1421_s28 = scalar_lea.vmem %s1567_s0, %s1100_s25  ;;  %1253 = vmatpush3.bf16.msra.mxu0 %v448_v4  ;;  %1291 = vmatpush3.bf16.msra.mxu1 %v448_v4  ;;  %s1460_s5 = scalar_lea.vmem %s1569_s2, %s1100_s25 }
  0x11   : > { %v1321_v3 = vld [vmem:[%s1421_s28] sm:$0xff]   ;;  %v1322_v5 = vld [vmem:[%s1421_s28 + $0x8] sm:$0xff]   ;;  %v1323_v6 = vld [vmem:[%s1421_s28 + $0x10] sm:$0xff]   ;;  %s262_s11 = scalar_lea.vmem %s1571_s4, %s1577_s15 }
  0x12   : > { %1254 = vmatprep.mubr.msk.bf16.mxu0 %vm397_vm1, %v1321_v3  ;;  %v1329_v7 = vld [vmem:[%s1421_s28 + $0x40] sm:$0xff]   ;;  %v1330_v8 = vld [vmem:[%s1421_s28 + $0x48] sm:$0xff]   ;;  %v1331_v9 = vld [vmem:[%s1421_s28 + $0x50] sm:$0xff]  }
  0x13   : > { %1255 = vmatmul.mubr.msk.bf16.vlgmr.msra.gmra.mrb[0].mxu0 %vm397_vm1, %v1322_v5  ;;  %1270 = vmatprep.mubr.msk.bf16.mxu1 %vm397_vm1, %v1329_v7  ;;  %v1324_v10 = vld [vmem:[%s1421_s28 + $0x18] sm:$0xff]   ;;  %v1325_v11 = vld [vmem:[%s1421_s28 + $0x20] sm:$0xff]   ;;  %v1326_v14 = vld [vmem:[%s1421_s28 + $0x28] sm:$0xff]  }
  0x14   : > { %1258 = vmatprep.mubr.msk.bf16.mxu0 %vm397_vm1, %v1323_v6  ;;  %1271 = vmatmul.mubr.msk.bf16.vlgmr.msra.gmra.mrb[0].mxu1 %vm397_vm1, %v1330_v8  ;;  %v1332_v12 = vld [vmem:[%s1421_s28 + $0x58] sm:$0xff]   ;;  %v1333_v13 = vld [vmem:[%s1421_s28 + $0x60] sm:$0xff]   ;;  %v1327_v15 = vld [vmem:[%s1421_s28 + $0x30] sm:$0xff]  }
  0x15   : > { %1274 = vmatprep.mubr.msk.bf16.mxu1 %vm397_vm1, %v1331_v9  ;;  %v1334_v16 = vld [vmem:[%s1421_s28 + $0x68] sm:$0xff]   ;;  %v1335_v17 = vld [vmem:[%s1421_s28 + $0x70] sm:$0xff]   ;;  %v1328_v18 = vld [vmem:[%s1421_s28 + $0x38] sm:$0xff]  }
  0x16   : > { %v1336_v19 = vld [vmem:[%s1421_s28 + $0x78] sm:$0xff]  }
  0x1b   : > { %1259 = vmatmul.mubr.msk.bf16.gmra.mrb[4].mxu0 %vm397_vm1, %v1324_v10 }
  0x1c   : > { %1262 = vmatprep.mubr.msk.bf16.mxu0 %vm397_vm1, %v1325_v11  ;;  %1275 = vmatmul.mubr.msk.bf16.gmra.mrb[4].mxu1 %vm397_vm1, %v1332_v12 }
  0x1d   : > { %1278 = vmatprep.mubr.msk.bf16.mxu1 %vm397_vm1, %v1333_v13 }
  0x23   : > { %1263 = vmatmul.mubr.msk.bf16.gmra.mrb[8].mxu0 %vm397_vm1, %v1326_v14 }
  0x24   : > { %1266 = vmatprep.mubr.msk.bf16.mxu0 %vm397_vm1, %v1327_v15  ;;  %1279 = vmatmul.mubr.msk.bf16.gmra.mrb[8].mxu1 %vm397_vm1, %v1334_v16 }
  0x25   : > { %1282 = vmatprep.mubr.msk.bf16.mxu1 %vm397_vm1, %v1335_v17 }
  0x2b   : > { %1267 = vmatmul.mubr.msk.bf16.gmra.mrb[12].mxu0 %vm397_vm1, %v1328_v18 }
  0x2c   : > { %1283 = vmatmul.mubr.msk.bf16.gmra.mrb[12].mxu1 %vm397_vm1, %v1336_v19 }
  0xe6   : > { %v1256_v20 = vpop.f32.mrb[0].mxu0 }
  0xe7   : > { %v484_v21 = vpop.f32.mrb[1].mxu0  ;;  %v1462_v29 = vpop.f32.mrb[0].mxu1  ;;  %v811_v31 = vmul.f32 %v1256_v20, %v1256_v20 }
  0xe8   : > { %v1257_v22 = vpop.f32.mrb[2].mxu0  ;;  %v809_v25 = vmul.f32 %v484_v21, %v484_v21  ;;  %v1465_v30 = vpop.f32.mrb[1].mxu1 }
  0xe9   : > { %v1142_v23 = vpack.c.bf16 %v1257_v22, %v1256_v20  ;;  %v487_v24 = vpop.f32.mrb[3].mxu0  ;;  %v1468_v34 = vpop.f32.mrb[2].mxu1  ;;  %v812_v37 = vmul.f32 %v1257_v22, %v1257_v22 }
  0xea   : > { %v1137_v26 = vpack.c.bf16 %v487_v24, %v484_v21  ;;  %v771_v27 = vadd.f32 %v487_v24, %v484_v21  ;;  %v810_v28 = vmul.f32 %v487_v24, %v487_v24  ;;  %v1182_v35 = vpack.c.bf16 %v1468_v34, %v1462_v29  ;;  %v1472_v36 = vpop.f32.mrb[3].mxu1 }
  0xeb   : > { %1214 = vst [vmem:[%s1460_s5 + $0x8] sm:$0xff] %v1142_v23   ;;  %v1177_v41 = vpack.c.bf16 %v1472_v36, %v1465_v30 }
  0xec   : > { %1138 = vst [vmem:[%s1460_s5] sm:$0xff] %v1137_v26   ;;  %v772_v32 = vadd.f32 %v1256_v20, %v771_v27  ;;  %v841_v33 = vadd.f32 %v810_v28, %v809_v25  ;;  %1222 = vst [vmem:[%s1460_s5 + $0x48] sm:$0xff] %v1182_v35  }
  0xed   : > { %1221 = vst [vmem:[%s1460_s5 + $0x40] sm:$0xff] %v1177_v41  }
  0xee   : > { %v842_v38 = vadd.f32 %v841_v33, %v811_v31  ;;  %v1260_v39 = vpop.f32.mrb[4].mxu0  ;;  %v773_v40 = vadd.f32 %v1257_v22, %v772_v32 }
  0xef   : > { %v500_v42 = vpop.f32.mrb[5].mxu0  ;;  %v1478_v53 = vpop.f32.mrb[4].mxu1  ;;  %v815_v55 = vmul.f32 %v1260_v39, %v1260_v39 }
  0xf0   : > { %v774_v43 = vadd.f32 %v773_v40, %v500_v42  ;;  %v813_v44 = vmul.f32 %v500_v42, %v500_v42  ;;  %v843_v45 = vadd.f32 %v842_v38, %v812_v37  ;;  %v1261_v46 = vpop.f32.mrb[6].mxu0  ;;  %v1481_v54 = vpop.f32.mrb[5].mxu1 }
  0xf1   : > { %v1152_v47 = vpack.c.bf16 %v1261_v46, %v1260_v39  ;;  %v503_v48 = vpop.f32.mrb[7].mxu0  ;;  %v1484_v58 = vpop.f32.mrb[6].mxu1  ;;  %v816_v61 = vmul.f32 %v1261_v46, %v1261_v46 }
  0xf2   : > { %v844_v49 = vadd.f32 %v843_v45, %v813_v44  ;;  %v1147_v50 = vpack.c.bf16 %v503_v48, %v500_v42  ;;  %v775_v51 = vadd.f32 %v774_v43, %v503_v48  ;;  %v814_v52 = vmul.f32 %v503_v48, %v503_v48  ;;  %v1488_v60 = vpop.f32.mrb[7].mxu1 }
  0xf3   : > { %1216 = vst [vmem:[%s1460_s5 + $0x18] sm:$0xff] %v1152_v47   ;;  %v1192_v59 = vpack.c.bf16 %v1484_v58, %v1478_v53  ;;  %v1187_v1 = vpack.c.bf16 %v1488_v60, %v1481_v54  ;;  %v825_v47 = vmul.f32 %v1465_v30, %v1465_v30 }
  0xf4   : > { %1215 = vst [vmem:[%s1460_s5 + $0x10] sm:$0xff] %v1147_v50   ;;  %v776_v56 = vadd.f32 %v1260_v39, %v775_v51  ;;  %v845_v57 = vadd.f32 %v844_v49, %v814_v52 }
  0xf5   : > { %1224 = vst [vmem:[%s1460_s5 + $0x58] sm:$0xff] %v1192_v59   ;;  %1223 = vst [vmem:[%s1460_s5 + $0x50] sm:$0xff] %v1187_v1  }
  0xf6   : > { %v846_v62 = vadd.f32 %v845_v57, %v815_v55  ;;  %v1264_v63 = vpop.f32.mrb[8].mxu0  ;;  %v777_v0 = vadd.f32 %v1261_v46, %v776_v56 }
  0xf7   : > { %v516_v2 = vpop.f32.mrb[9].mxu0  ;;  %v1494_v13 = vpop.f32.mrb[8].mxu1  ;;  %v819_v15 = vmul.f32 %v1264_v63, %v1264_v63 }
  0xf8   : > { %v778_v3 = vadd.f32 %v777_v0, %v516_v2  ;;  %v817_v4 = vmul.f32 %v516_v2, %v516_v2  ;;  %v847_v5 = vadd.f32 %v846_v62, %v816_v61  ;;  %v1265_v6 = vpop.f32.mrb[10].mxu0  ;;  %v1497_v14 = vpop.f32.mrb[9].mxu1  ;;  %v826_v62 = vmul.f32 %v1472_v36, %v1472_v36 }
  0xf9   : > { %v1162_v7 = vpack.c.bf16 %v1265_v6, %v1264_v63  ;;  %v519_v8 = vpop.f32.mrb[11].mxu0  ;;  %v1500_v18 = vpop.f32.mrb[10].mxu1  ;;  %v820_v21 = vmul.f32 %v1265_v6, %v1265_v6 }
  0xfa   : > { %v848_v9 = vadd.f32 %v847_v5, %v817_v4  ;;  %v1157_v10 = vpack.c.bf16 %v519_v8, %v516_v2  ;;  %v779_v11 = vadd.f32 %v778_v3, %v519_v8  ;;  %v818_v12 = vmul.f32 %v519_v8, %v519_v8  ;;  %v1504_v20 = vpop.f32.mrb[11].mxu1 }
  0xfb   : > { %1218 = vst [vmem:[%s1460_s5 + $0x28] sm:$0xff] %v1162_v7   ;;  %v1202_v19 = vpack.c.bf16 %v1500_v18, %v1494_v13  ;;  %v1197_v25 = vpack.c.bf16 %v1504_v20, %v1497_v14  ;;  %v828_v2 = vmul.f32 %v1468_v34, %v1468_v34  ;;  %v829_v4 = vmul.f32 %v1481_v54, %v1481_v54 }
  0xfc   : > { %1217 = vst [vmem:[%s1460_s5 + $0x20] sm:$0xff] %v1157_v10   ;;  %v780_v16 = vadd.f32 %v1264_v63, %v779_v11  ;;  %v849_v17 = vadd.f32 %v848_v9, %v818_v12  ;;  %v827_v63 = vmul.f32 %v1462_v29, %v1462_v29  ;;  %v830_v8 = vmul.f32 %v1488_v60, %v1488_v60 }
  0xfd   : > { %1226 = vst [vmem:[%s1460_s5 + $0x68] sm:$0xff] %v1202_v19   ;;  %1225 = vst [vmem:[%s1460_s5 + $0x60] sm:$0xff] %v1197_v25   ;;  %v834_v19 = vmul.f32 %v1504_v20, %v1504_v20 }
  0xfe   : > { %v850_v22 = vadd.f32 %v849_v17, %v819_v15  ;;  %v1268_v23 = vpop.f32.mrb[12].mxu0  ;;  %v781_v24 = vadd.f32 %v1265_v6, %v780_v16 }
  0xff   : > { %v532_v26 = vpop.f32.mrb[13].mxu0  ;;  %v1284_v41 = vpop.f32.mrb[12].mxu1  ;;  %v823_v43 = vmul.f32 %v1268_v23, %v1268_v23 }
 0x100   : > { %v782_v27 = vadd.f32 %v781_v24, %v532_v26  ;;  %v821_v28 = vmul.f32 %v532_v26, %v532_v26  ;;  %v851_v31 = vadd.f32 %v850_v22, %v820_v21  ;;  %v1269_v32 = vpop.f32.mrb[14].mxu0  ;;  %v596_v42 = vpop.f32.mrb[13].mxu1 }
 0x101   : > { %v1172_v33 = vpack.c.bf16 %v1269_v32, %v1268_v23  ;;  %v535_v35 = vpop.f32.mrb[15].mxu0  ;;  %v1285_v46 = vpop.f32.mrb[14].mxu1  ;;  %v824_v50 = vmul.f32 %v1269_v32, %v1269_v32 }
 0x102   : > { %v852_v37 = vadd.f32 %v851_v31, %v821_v28  ;;  %v1167_v38 = vpack.c.bf16 %v535_v35, %v532_v26  ;;  %v783_v39 = vadd.f32 %v782_v27, %v535_v35  ;;  %v822_v40 = vmul.f32 %v535_v35, %v535_v35  ;;  %v599_v49 = vpop.f32.mrb[15].mxu1 }
 0x103   : > { %1220 = vst [vmem:[%s1460_s5 + $0x38] sm:$0xff] %v1172_v33   ;;  %v1212_v48 = vpack.c.bf16 %v1285_v46, %v1284_v41  ;;  %v1207_v55 = vpack.c.bf16 %v599_v49, %v596_v42  ;;  %v838_v31 = vmul.f32 %v599_v49, %v599_v49  ;;  %v840_v35 = vmul.f32 %v1285_v46, %v1285_v46 }
 0x104   : > { %1219 = vst [vmem:[%s1460_s5 + $0x30] sm:$0xff] %v1167_v38   ;;  %v784_v44 = vadd.f32 %v1268_v23, %v783_v39  ;;  %v853_v45 = vadd.f32 %v852_v37, %v822_v40 }
 0x105   : > { %1228 = vst [vmem:[%s1460_s5 + $0x78] sm:$0xff] %v1212_v48   ;;  %1227 = vst [vmem:[%s1460_s5 + $0x70] sm:$0xff] %v1207_v55  }
 0x106   : > { %v854_v51 = vadd.f32 %v853_v45, %v823_v43  ;;  %v785_v52 = vadd.f32 %v1269_v32, %v784_v44  ;;  %v839_v32 = vmul.f32 %v1284_v41, %v1284_v41 }
 0x108   : > { %v786_v56 = vadd.f32 %v785_v52, %v1465_v30  ;;  %v855_v57 = vadd.f32 %v854_v51, %v824_v50 }
 0x10a   : > { %v856_v59 = vadd.f32 %v855_v57, %v825_v47  ;;  %v787_v61 = vadd.f32 %v786_v56, %v1472_v36 }
 0x10c   : > { %v788_v0 = vadd.f32 %v1462_v29, %v787_v61  ;;  %v857_v1 = vadd.f32 %v856_v59, %v826_v62  ;;  %v831_v29 = vmul.f32 %v1478_v53, %v1478_v53 }
 0x10e   : > { %v858_v3 = vadd.f32 %v857_v1, %v827_v63  ;;  %v789_v30 = vadd.f32 %v1468_v34, %v788_v0  ;;  %v832_v34 = vmul.f32 %v1484_v58, %v1484_v58 }
 0x110   : > { %v790_v5 = vadd.f32 %v789_v30, %v1481_v54  ;;  %v859_v6 = vadd.f32 %v858_v3, %v828_v2  ;;  %v833_v54 = vmul.f32 %v1497_v14, %v1497_v14 }
 0x112   : > { %v860_v7 = vadd.f32 %v859_v6, %v829_v4  ;;  %v791_v36 = vadd.f32 %v790_v5, %v1488_v60 }
 0x114   : > { %v792_v9 = vadd.f32 %v1478_v53, %v791_v36  ;;  %v861_v10 = vadd.f32 %v860_v7, %v830_v8  ;;  %v835_v53 = vmul.f32 %v1494_v13, %v1494_v13 }
 0x116   : > { %v862_v11 = vadd.f32 %v861_v10, %v831_v29  ;;  %v793_v12 = vadd.f32 %v1484_v58, %v792_v9  ;;  %v836_v58 = vmul.f32 %v1500_v18, %v1500_v18 }
 0x118   : > { %v794_v15 = vadd.f32 %v793_v12, %v1497_v14  ;;  %v863_v16 = vadd.f32 %v862_v11, %v832_v34  ;;  %v837_v14 = vmul.f32 %v596_v42, %v596_v42 }
 0x11a   : > { %v864_v17 = vadd.f32 %v863_v16, %v833_v54  ;;  %v795_v60 = vadd.f32 %v794_v15, %v1504_v20 }
 0x11c   : > { %v796_v21 = vadd.f32 %v1494_v13, %v795_v60  ;;  %v865_v22 = vadd.f32 %v864_v17, %v834_v19 }
 0x11e   : > { %v866_v23 = vadd.f32 %v865_v22, %v835_v53  ;;  %v797_v24 = vadd.f32 %v1500_v18, %v796_v21 }
 0x120   : > { %v798_v25 = vadd.f32 %v797_v24, %v596_v42  ;;  %v867_v26 = vadd.f32 %v866_v23, %v836_v58 }
 0x122   : > { %v868_v27 = vadd.f32 %v867_v26, %v837_v14  ;;  %v799_v28 = vadd.f32 %v798_v25, %v599_v49 }
 0x124   : > { %v800_v20 = vadd.f32 %v1284_v41, %v799_v28  ;;  %v869_v33 = vadd.f32 %v868_v27, %v838_v31 }
 0x126   : > { %v801_v13 = vadd.f32 %v1285_v46, %v800_v20  ;;  %v870_v37 = vadd.f32 %v869_v33, %v839_v32 }
 0x128   : > { %v802_v38 = vrot.slane %v801_v13, 4  ;;  %v871_v39 = vadd.f32 %v870_v37, %v840_v35 }
 0x12a   : > { %v803_v40 = vadd.f32 %v802_v38, %v801_v13  ;;  %v872_v43 = vrot.slane %v871_v39, 4 }
 0x12c   : > { %v804_v44 = vrot.slane %v803_v40, 2  ;;  %v873_v18 = vadd.f32 %v872_v43, %v871_v39 }
 0x12e   : > { %v805_v45 = vadd.f32 %v804_v44, %v803_v40  ;;  %v874_v42 = vrot.slane %v873_v18, 2 }
 0x130   : > { %v806_v47 = vrot.slane %v805_v45, 1  ;;  %v875_v48 = vadd.f32 %v874_v42, %v873_v18 }
 0x132   : > { %v807_v41 = vadd.f32 %v806_v47, %v805_v45  ;;  %v876_v49 = vrot.slane %v875_v48, 1 }
 0x134   : > { %808 = vst [vmem:[%s257_s8] sm:$0x1] %v807_v41  ;;  %v877_v46 = vadd.f32 %v876_v49, %v875_v48 }
 0x136   : > { %878 = vst [vmem:[%s262_s11] sm:$0x1] %v877_v46 }
 0x137 PF: > { %s15_s17 = sadd.s32 1, %s1359_s17   ;;  %s1572_s15 = smov %s1355_s16 }
 0x138   : > { %p12_p5 = scmp.ge.s32.totalorder %s15_s17, 4   ;;  %s1573_s16 = smov %s1575_s18 }
 0x13a   :  { %14 = sbr.rel (!%p12_p5) target bundleno = 2 (0x2), region = 82 }

</bundles_post_ra>
